<compile_context>
chip_gen: v7x
topology: tpu7x:2x2x1
jax: 0.10.0
libtpu: 0.0.40
codegen_flags: <defaults>
</compile_context>

<pallas_src>
import math

import numpy as np
import jax
import jax.numpy as jnp
from jax import lax
from jax.experimental import pallas as pl
from jax.experimental.pallas import tpu as pltpu


_INV_SQRT2 = 1.0 / math.sqrt(2.0)


def _gelu_exact(x):
    # Matches torch.nn.functional.gelu default (exact erf formulation).
    return 0.5 * x * (1.0 + lax.erf(x * _INV_SQRT2))


def _round_up(a, b):
    return (a + b - 1) // b * b


def ffn_kernel(x_ref, wv_ref, wg_ref, bv_ref, bg_ref, w2_ref, b2_ref, o_ref, acc_ref):
    # Grid: (m_tile, h_tile).  h is the (possibly size-1) hidden reduction axis.
    # x_ref:  [TM, dim]      (input dtype; cast to bf16 in-kernel)
    # wv_ref: [dim, TH]      (bf16)  w1 "value" half slice
    # wg_ref: [dim, TH]      (bf16)  w1 "gate"  half slice
    # bv_ref: [1, TH] f32, bg_ref: [1, TH] f32
    # w2_ref: [TH, dim]      (bf16)
    # b2_ref: [1, dim] f32
    # o_ref:  [TM, dim]      (out dtype)
    # acc_ref:[TM, dim] f32  VMEM scratch accumulator
    h = pl.program_id(1)

    @pl.when(h == 0)
    def _():
        acc_ref[...] = jnp.zeros_like(acc_ref)

    x = x_ref[...].astype(wv_ref.dtype)

    # First linear, split into the two GEGLU halves (bf16 MXU, f32 accumulate).
    val = jnp.dot(x, wv_ref[...], preferred_element_type=jnp.float32) + bv_ref[...]
    gate = jnp.dot(x, wg_ref[...], preferred_element_type=jnp.float32) + bg_ref[...]

    # GEGLU in f32: val * gelu(gate).  Dropout(p=0.0) in eval mode is identity.
    # TODO(synk): p>0 dropout would need pltpu.prng_seed + prng_random_bits masking.
    g = val * _gelu_exact(gate)

    # Second linear: accumulate this hidden slice's contribution.
    acc_ref[...] += jnp.dot(g.astype(w2_ref.dtype), w2_ref[...],
                            preferred_element_type=jnp.float32)

    @pl.when(h == pl.num_programs(1) - 1)
    def _():
        o_ref[...] = (acc_ref[...] + b2_ref[...]).astype(o_ref.dtype)


def prepare_ffn_params(w1, b1, w2, b2, compute_dtype=jnp.bfloat16):
    """Hoisted, one-time param preprocessing (do NOT call per forward).

    Weights are in [in, out] layout (torch nn.Linear weights transposed):
      w1: [dim, 2*hidden], b1: [2*hidden], w2: [hidden, dim], b2: [dim].
    """
    dim, two_hidden = w1.shape
    hidden = two_hidden // 2
    return {
        "wv": jnp.asarray(w1[:, :hidden], compute_dtype),
        "wg": jnp.asarray(w1[:, hidden:], compute_dtype),
        "bv": jnp.asarray(b1[:hidden], jnp.float32).reshape(1, hidden),
        "bg": jnp.asarray(b1[hidden:], jnp.float32).reshape(1, hidden),
        "w2": jnp.asarray(w2, compute_dtype),
        "b2": jnp.asarray(b2, jnp.float32).reshape(1, dim),
    }


def feed_forward(x, params, *, out_dtype=None, tm=512, force_th=None):
    """x: [batch, seq, dim]; params from prepare_ffn_params()."""
    batch, seq, dim = x.shape
    M = batch * seq
    hidden = params["wv"].shape[1]
    out_dtype = x.dtype if out_dtype is None else out_dtype
    x_bytes = np.dtype(x.dtype).itemsize
    out_bytes = np.dtype(out_dtype).itemsize

    # --- Generation-aware VMEM budget (v7x: 64 MiB/TC, v5e/v6e: 128 MiB) ---
    try:
        vmem_capacity = int(pltpu.get_tpu_info().vmem_capacity_bytes)
    except Exception:
        vmem_capacity = 64 << 20  # conservative default
    vmem_budget = int(0.70 * vmem_capacity)

    # --- M tile: multiple of 8, <= tm, and >= 2 grid steps when possible (megacore) ---
    TM = min(tm, _round_up(M, 8))
    if pl.cdiv(M, TM) < 2 and M > 8:
        TM = max(8, _round_up(pl.cdiv(M, 2), 8))

    def footprint(tm_, th_, wbuf):
        weights = (2 * dim * th_ + th_ * dim) * 2 * wbuf        # bf16 w1-halves + w2 tiles
        biases = (2 * th_ + dim) * 4 * wbuf
        io = 2 * tm_ * dim * x_bytes + 2 * tm_ * dim * out_bytes  # double-buffered x / out
        acc = tm_ * dim * 4
        inter = tm_ * th_ * (3 * 4 + 2)                          # val/gate/g f32 + g bf16
        return weights + biases + io + acc + inter

    # --- Hidden tile: resident if it fits, otherwise stream hidden blocks ---
    if force_th is not None:
        TH = int(force_th)
    elif footprint(TM, hidden, 1) <= vmem_budget:
        TH = hidden                                   # weights fully resident in VMEM
    else:
        TH = None
        for align in (256, 128):                      # 256-aligned preferred (v6e/v7x MXU)
            cand = (hidden // align) * align
            while cand >= align:
                if hidden % cand == 0 and footprint(TM, cand, 2) <= vmem_budget:
                    TH = cand
                    break
                cand -= align
            if TH is not None:
                break
        if TH is None:
            TM = max(8, min(TM, 256))
            TH = 128 if hidden % 128 == 0 else hidden
    num_h = max(1, hidden // TH)
    num_m = pl.cdiv(M, TM)
    grid = (num_m, num_h)

    # --- VMEM limit tied to capacity (not a fixed 48 MiB cap) ---
    fp2 = footprint(TM, TH, 2)
    vmem_limit = int(min(max(int(1.5 * fp2), 32 << 20), int(0.85 * vmem_capacity)))

    weight_bytes = (2 * dim * hidden + hidden * dim) * 2
    bias_bytes = (2 * hidden + dim) * 4
    reread = num_m if num_h > 1 else 1               # streamed weights are re-read per M tile
    cost = pl.CostEstimate(
        flops=6 * M * dim * hidden,
        transcendentals=M * hidden,
        bytes_accessed=M * dim * (x_bytes + out_bytes) + (weight_bytes + bias_bytes) * reread,
    )

    x2d = x.reshape(M, dim)

    def _call(single_buffer_resident):
        # Constant-index (resident) weight specs get a single buffer; streamed specs keep
        # the default double-buffering so DMA hides behind the MXU.
        if single_buffer_resident and num_h == 1:
            w_kwargs = {"pipeline_mode": pl.Buffered(1)}
        else:
            w_kwargs = {}
        in_specs = [
            pl.BlockSpec((TM, dim), lambda i, h: (i, 0)),              # x tile (pipelined)
            pl.BlockSpec((dim, TH), lambda i, h: (0, h), **w_kwargs),  # w1 val half
            pl.BlockSpec((dim, TH), lambda i, h: (0, h), **w_kwargs),  # w1 gate half
            pl.BlockSpec((1, TH), lambda i, h: (0, h), **w_kwargs),    # b1 val
            pl.BlockSpec((1, TH), lambda i, h: (0, h), **w_kwargs),    # b1 gate
            pl.BlockSpec((TH, dim), lambda i, h: (h, 0), **w_kwargs),  # w2
            pl.BlockSpec((1, dim), lambda i, h: (0, 0), **w_kwargs),   # b2
        ]
        return pl.pallas_call(
            ffn_kernel,
            out_shape=jax.ShapeDtypeStruct((M, dim), out_dtype),
            grid=grid,
            in_specs=in_specs,
            out_specs=pl.BlockSpec((TM, dim), lambda i, h: (i, 0)),
            scratch_shapes=[pltpu.VMEM((TM, dim), jnp.float32)],
            compiler_params=pltpu.CompilerParams(
                dimension_semantics=("parallel", "arbitrary"),
                vmem_limit_bytes=vmem_limit,
            ),
            cost_estimate=cost,
        )(x2d, params["wv"], params["wg"], params["bv"], params["bg"],
          params["w2"], params["b2"])

    try:
        out2d = _call(True)
    except Exception:
        # Fallback if pl.Buffered(1) on constant-index specs is rejected by this jax version.
        out2d = _call(False)

    return out2d.reshape(batch, seq, dim)


def _reference_bf16(x, w1, b1, w2, b2):
    """Same bf16-matmul / f32-accumulate semantics as the kernel (tight check)."""
    dim = x.shape[-1]
    hid = w1.shape[1] // 2
    xb = x.reshape(-1, dim).astype(jnp.bfloat16)
    val = jnp.dot(xb, w1[:, :hid].astype(jnp.bfloat16),
                  preferred_element_type=jnp.float32) + b1[:hid]
    gate = jnp.dot(xb, w1[:, hid:].astype(jnp.bfloat16),
                   preferred_element_type=jnp.float32) + b1[hid:]
    g = val * (0.5 * gate * (1.0 + lax.erf(gate * _INV_SQRT2)))
    o = jnp.dot(g.astype(jnp.bfloat16), w2.astype(jnp.bfloat16),
                preferred_element_type=jnp.float32) + b2
    return o.reshape(x.shape)


def _reference_f32(x, w1, b1, w2, b2):
    """Pure-f32 torch-equivalent reference (loose check — bf16 MXU numerics delta)."""
    dim = x.shape[-1]
    hid = w1.shape[1] // 2
    h = x.reshape(-1, dim) @ w1 + b1
    v, g = h[:, :hid], h[:, hid:]
    geglu = v * (0.5 * g * (1.0 + lax.erf(g * _INV_SQRT2)))
    return (geglu @ w2 + b2).reshape(x.shape)


def _make_params(key, dim, hidden):
    k_w1, k_b1, k_w2, k_b2 = jax.random.split(key, 4)
    bound1 = 1.0 / math.sqrt(dim)
    w1 = jax.random.uniform(k_w1, (dim, 2 * hidden), minval=-bound1, maxval=bound1,
                            dtype=jnp.float32)
    b1 = jax.random.uniform(k_b1, (2 * hidden,), minval=-bound1, maxval=bound1,
                            dtype=jnp.float32)
    bound2 = 1.0 / math.sqrt(hidden)
    w2 = jax.random.uniform(k_w2, (hidden, dim), minval=-bound2, maxval=bound2,
                            dtype=jnp.float32)
    b2 = jax.random.uniform(k_b2, (dim,), minval=-bound2, maxval=bound2,
                            dtype=jnp.float32)
    return w1, b1, w2, b2


if __name__ == "__main__":
    key = jax.random.PRNGKey(0)
    k1, k2, k3, k4 = jax.random.split(key, 4)

    # --- Config A: small module config (dim=32, mult=4 -> hidden=128), resident path ---
    batch, seq, dim, mult = 2, 8, 32, 4
    hidden = dim * mult
    x = jax.random.normal(k1, (batch, seq, dim), dtype=jnp.float32)
    w1, b1, w2, b2 = _make_params(k2, dim, hidden)

    params = prepare_ffn_params(w1, b1, w2, b2)   # hoisted out of the hot path
    out = feed_forward(x, params)
    jax.block_until_ready(out)

    out_bf = _reference_bf16(x, w1, b1, w2, b2)
    assert jnp.allclose(out, out_bf, atol=2e-3, rtol=2e-3), \
        "mismatch vs bf16-emulating reference (resident path)"
    out_f32 = _reference_f32(x, w1, b1, w2, b2)
    assert jnp.allclose(out, out_f32, atol=5e-2, rtol=5e-2), \
        "mismatch vs f32 reference (resident path)"

    # --- Config B: hidden-streaming accumulator path + ragged M block (seq=7, TH<hidden) ---
    batch_b, seq_b, dim_b, mult_b = 2, 7, 64, 4
    hidden_b = dim_b * mult_b  # 256
    xb = jax.random.normal(k3, (batch_b, seq_b, dim_b), dtype=jnp.float32)
    w1b, b1b, w2b, b2b = _make_params(k4, dim_b, hidden_b)

    params_b = prepare_ffn_params(w1b, b1b, w2b, b2b)
    out_b = feed_forward(xb, params_b, force_th=128)   # 2 hidden blocks -> accumulator path
    jax.block_until_ready(out_b)

    out_b_bf = _reference_bf16(xb, w1b, b1b, w2b, b2b)
    assert jnp.allclose(out_b, out_b_bf, atol=2e-3, rtol=2e-3), \
        "mismatch vs bf16-emulating reference (streaming path)"
    out_b_f32 = _reference_f32(xb, w1b, b1b, w2b, b2b)
    assert jnp.allclose(out_b, out_b_f32, atol=5e-2, rtol=5e-2), \
        "mismatch vs f32 reference (streaming path)"

    print("KERNEL_OK")
</pallas_src>

<mosaic_0001>
module attributes {stable_mosaic.version = 11 : i64} {
  func.func @ffn_kernel(%arg0: i32, %arg1: i32, %arg2: memref<8x32xf32, #tpu.memory_space<vmem>>, %arg3: memref<32x128xbf16, #tpu.memory_space<vmem>>, %arg4: memref<32x128xbf16, #tpu.memory_space<vmem>>, %arg5: memref<1x128xf32, #tpu.memory_space<vmem>>, %arg6: memref<1x128xf32, #tpu.memory_space<vmem>>, %arg7: memref<128x32xbf16, #tpu.memory_space<vmem>>, %arg8: memref<1x32xf32, #tpu.memory_space<vmem>>, %arg9: memref<8x32xf32, #tpu.memory_space<vmem>>, %arg10: memref<8x32xf32, #tpu.memory_space<vmem>>) attributes {dimension_semantics = [#tpu.dimension_semantics<parallel>, #tpu.dimension_semantics<arbitrary>], iteration_bounds = array<i64: 2, 1>, scalar_prefetch = 0 : i64, scratch_operands = 1 : i64, tpu.core_type = #tpu.core_type<tc>, window_params = [{transform_indices = @transform_0, window_bounds = array<i64: 8, 32>}, {pipeline_mode = #tpu.pipeline_mode<synchronous>, transform_indices = @transform_1, window_bounds = array<i64: 32, 128>}, {pipeline_mode = #tpu.pipeline_mode<synchronous>, transform_indices = @transform_2, window_bounds = array<i64: 32, 128>}, {pipeline_mode = #tpu.pipeline_mode<synchronous>, transform_indices = @transform_3, window_bounds = array<i64: 1, 128>}, {pipeline_mode = #tpu.pipeline_mode<synchronous>, transform_indices = @transform_4, window_bounds = array<i64: 1, 128>}, {pipeline_mode = #tpu.pipeline_mode<synchronous>, transform_indices = @transform_5, window_bounds = array<i64: 128, 32>}, {pipeline_mode = #tpu.pipeline_mode<synchronous>, transform_indices = @transform_6, window_bounds = array<i64: 1, 32>}, {transform_indices = @transform_7, window_bounds = array<i64: 8, 32>}]} {
    %c0_i32 = arith.constant 0 : i32
    %0 = arith.cmpi eq, %arg1, %c0_i32 : i32
    %1 = arith.extui %0 : i1 to i32
    %c0_i32_0 = arith.constant 0 : i32
    %2 = arith.cmpi ne, %1, %c0_i32_0 : i32
    scf.if %2 {
      %cst_23 = arith.constant 0.000000e+00 : f32
      %33 = vector.broadcast %cst_23 : f32 to vector<8x32xf32>
      %c0_24 = arith.constant 0 : index
      %c0_25 = arith.constant 0 : index
      %34 = vector.load %arg10[%c0_24, %c0_25] : memref<8x32xf32, #tpu.memory_space<vmem>>, vector<8x32xf32>
      tpu.vector_store %arg10[%c0_24, %c0_25], %33 {strides = array<i32>} : memref<8x32xf32, #tpu.memory_space<vmem>>, vector<8x32xf32>,
    } else {
    }
    %c0 = arith.constant 0 : index
    %c0_1 = arith.constant 0 : index
    %3 = vector.load %arg2[%c0, %c0_1] : memref<8x32xf32, #tpu.memory_space<vmem>>, vector<8x32xf32>
    %4 = arith.truncf %3 : vector<8x32xf32> to vector<8x32xbf16>
    %c0_2 = arith.constant 0 : index
    %c0_3 = arith.constant 0 : index
    %5 = vector.load %arg3[%c0_2, %c0_3] : memref<32x128xbf16, #tpu.memory_space<vmem>>, vector<32x128xbf16>
    %cst = arith.constant dense<0.000000e+00> : vector<8x128xf32>
    %6 = tpu.matmul %4, %5, %cst {dimension_numbers = #tpu.dot_dimension_numbers<[1], [0], [0], [1], [0, 0, 1, 1], [], []>} : vector<8x32xbf16>, vector<32x128xbf16>, vector<8x128xf32> -> vector<8x128xf32>
    %c0_4 = arith.constant 0 : index
    %c0_5 = arith.constant 0 : index
    %7 = vector.load %arg5[%c0_4, %c0_5] : memref<1x128xf32, #tpu.memory_space<vmem>>, vector<1x128xf32>
    %8 = vector.broadcast %7 : vector<1x128xf32> to vector<8x128xf32>
    %9 = arith.addf %6, %8 : vector<8x128xf32>
    %c0_6 = arith.constant 0 : index
    %c0_7 = arith.constant 0 : index
    %10 = vector.load %arg4[%c0_6, %c0_7] : memref<32x128xbf16, #tpu.memory_space<vmem>>, vector<32x128xbf16>
    %cst_8 = arith.constant dense<0.000000e+00> : vector<8x128xf32>
    %11 = tpu.matmul %4, %10, %cst_8 {dimension_numbers = #tpu.dot_dimension_numbers<[1], [0], [0], [1], [0, 0, 1, 1], [], []>} : vector<8x32xbf16>, vector<32x128xbf16>, vector<8x128xf32> -> vector<8x128xf32>
    %c0_9 = arith.constant 0 : index
    %c0_10 = arith.constant 0 : index
    %12 = vector.load %arg6[%c0_9, %c0_10] : memref<1x128xf32, #tpu.memory_space<vmem>>, vector<1x128xf32>
    %13 = vector.broadcast %12 : vector<1x128xf32> to vector<8x128xf32>
    %14 = arith.addf %11, %13 : vector<8x128xf32>
    %cst_11 = arith.constant 5.000000e-01 : f32
    %15 = vector.broadcast %cst_11 : f32 to vector<8x128xf32>
    %16 = arith.mulf %15, %14 : vector<8x128xf32>
    %cst_12 = arith.constant 0.707106769 : f32
    %17 = vector.broadcast %cst_12 : f32 to vector<8x128xf32>
    %18 = arith.mulf %14, %17 : vector<8x128xf32>
    %19 = math.erf %18 : vector<8x128xf32>
    %cst_13 = arith.constant 1.000000e+00 : f32
    %20 = vector.broadcast %cst_13 : f32 to vector<8x128xf32>
    %21 = arith.addf %20, %19 : vector<8x128xf32>
    %22 = arith.mulf %16, %21 : vector<8x128xf32>
    %23 = arith.mulf %9, %22 : vector<8x128xf32>
    %c0_14 = arith.constant 0 : index
    %c0_15 = arith.constant 0 : index
    %24 = vector.load %arg10[%c0_14, %c0_15] : memref<8x32xf32, #tpu.memory_space<vmem>>, vector<8x32xf32>
    %25 = arith.truncf %23 : vector<8x128xf32> to vector<8x128xbf16>
    %c0_16 = arith.constant 0 : index
    %c0_17 = arith.constant 0 : index
    %26 = vector.load %arg7[%c0_16, %c0_17] : memref<128x32xbf16, #tpu.memory_space<vmem>>, vector<128x32xbf16>
    %cst_18 = arith.constant dense<0.000000e+00> : vector<8x32xf32>
    %27 = tpu.matmul %25, %26, %cst_18 {dimension_numbers = #tpu.dot_dimension_numbers<[1], [0], [0], [1], [0, 0, 1, 1], [], []>} : vector<8x128xbf16>, vector<128x32xbf16>, vector<8x32xf32> -> vector<8x32xf32>
    %28 = arith.addf %24, %27 : vector<8x32xf32>
    %c0_19 = arith.constant 0 : index
    %c0_20 = arith.constant 0 : index
    %29 = vector.load %arg10[%c0_19, %c0_20] : memref<8x32xf32, #tpu.memory_space<vmem>>, vector<8x32xf32>
    tpu.vector_store %arg10[%c0_19, %c0_20], %28 {strides = array<i32>} : memref<8x32xf32, #tpu.memory_space<vmem>>, vector<8x32xf32>,
    %c0_i32_21 = arith.constant 0 : i32
    %30 = arith.cmpi eq, %arg1, %c0_i32_21 : i32
    %31 = arith.extui %30 : i1 to i32
    %c0_i32_22 = arith.constant 0 : i32
    %32 = arith.cmpi ne, %31, %c0_i32_22 : i32
    scf.if %32 {
      %c0_23 = arith.constant 0 : index
      %c0_24 = arith.constant 0 : index
      %33 = vector.load %arg10[%c0_23, %c0_24] : memref<8x32xf32, #tpu.memory_space<vmem>>, vector<8x32xf32>
      %c0_25 = arith.constant 0 : index
      %c0_26 = arith.constant 0 : index
      %34 = vector.load %arg8[%c0_25, %c0_26] : memref<1x32xf32, #tpu.memory_space<vmem>>, vector<1x32xf32>
      %35 = vector.broadcast %34 : vector<1x32xf32> to vector<8x32xf32>
      %36 = arith.addf %33, %35 : vector<8x32xf32>
      %c0_27 = arith.constant 0 : index
      %c0_28 = arith.constant 0 : index
      %37 = vector.load %arg9[%c0_27, %c0_28] : memref<8x32xf32, #tpu.memory_space<vmem>>, vector<8x32xf32>
      tpu.vector_store %arg9[%c0_27, %c0_28], %36 {strides = array<i32>} : memref<8x32xf32, #tpu.memory_space<vmem>>, vector<8x32xf32>,
    } else {
    }
    return
  }
  func.func @transform_0(%arg0: i32, %arg1: i32) -> (i32, i32) {
    %c0_i32 = arith.constant 0 : i32
    %c0_i32_0 = arith.constant 0 : i32
    return %arg0, %c0_i32 : i32, i32
  }
  func.func @transform_1(%arg0: i32, %arg1: i32) -> (i32, i32) {
    %c0_i32 = arith.constant 0 : i32
    %c0_i32_0 = arith.constant 0 : i32
    return %c0_i32, %arg1 : i32, i32
  }
  func.func @transform_2(%arg0: i32, %arg1: i32) -> (i32, i32) {
    %c0_i32 = arith.constant 0 : i32
    %c0_i32_0 = arith.constant 0 : i32
    return %c0_i32, %arg1 : i32, i32
  }
  func.func @transform_3(%arg0: i32, %arg1: i32) -> (i32, i32) {
    %c0_i32 = arith.constant 0 : i32
    %c0_i32_0 = arith.constant 0 : i32
    return %c0_i32, %arg1 : i32, i32
  }
  func.func @transform_4(%arg0: i32, %arg1: i32) -> (i32, i32) {
    %c0_i32 = arith.constant 0 : i32
    %c0_i32_0 = arith.constant 0 : i32
    return %c0_i32, %arg1 : i32, i32
  }
  func.func @transform_5(%arg0: i32, %arg1: i32) -> (i32, i32) {
    %c0_i32 = arith.constant 0 : i32
    %c0_i32_0 = arith.constant 0 : i32
    return %arg1, %c0_i32 : i32, i32
  }
  func.func @transform_6(%arg0: i32, %arg1: i32) -> (i32, i32) {
    %c0_i32 = arith.constant 0 : i32
    %c0_i32_0 = arith.constant 0 : i32
    %c0_i32_1 = arith.constant 0 : i32
    return %c0_i32, %c0_i32_0 : i32, i32
  }
  func.func @transform_7(%arg0: i32, %arg1: i32) -> (i32, i32) {
    %c0_i32 = arith.constant 0 : i32
    %c0_i32_0 = arith.constant 0 : i32
    return %arg0, %c0_i32 : i32, i32
  }
}

module attributes {stable_mosaic.version = 11 : i64} {
  func.func @ffn_kernel(%arg0: i32, %arg1: i32, %arg2: memref<8x32xf32, #tpu.memory_space<vmem>>, %arg3: memref<32x128xbf16, #tpu.memory_space<vmem>>, %arg4: memref<32x128xbf16, #tpu.memory_space<vmem>>, %arg5: memref<1x128xf32, #tpu.memory_space<vmem>>, %arg6: memref<1x128xf32, #tpu.memory_space<vmem>>, %arg7: memref<128x32xbf16, #tpu.memory_space<vmem>>, %arg8: memref<1x32xf32, #tpu.memory_space<vmem>>, %arg9: memref<8x32xf32, #tpu.memory_space<vmem>>, %arg10: memref<8x32xf32, #tpu.memory_space<vmem>>) attributes {dimension_semantics = [#tpu.dimension_semantics<parallel>, #tpu.dimension_semantics<arbitrary>], iteration_bounds = array<i64: 2, 1>, scalar_prefetch = 0 : i64, scratch_operands = 1 : i64, tpu.core_type = #tpu.core_type<tc>, window_params = [{transform_indices = @transform_0, window_bounds = array<i64: 8, 32>}, {transform_indices = @transform_1, window_bounds = array<i64: 32, 128>}, {transform_indices = @transform_2, window_bounds = array<i64: 32, 128>}, {transform_indices = @transform_3, window_bounds = array<i64: 1, 128>}, {transform_indices = @transform_4, window_bounds = array<i64: 1, 128>}, {transform_indices = @transform_5, window_bounds = array<i64: 128, 32>}, {pipeline_mode = #tpu.pipeline_mode<synchronous>, transform_indices = @transform_6, window_bounds = array<i64: 1, 32>}, {transform_indices = @transform_7, window_bounds = array<i64: 8, 32>}]} {
    %c0_i32 = arith.constant 0 : i32
    %0 = arith.cmpi eq, %arg1, %c0_i32 : i32
    %1 = arith.extui %0 : i1 to i32
    %c0_i32_0 = arith.constant 0 : i32
    %2 = arith.cmpi ne, %1, %c0_i32_0 : i32
    scf.if %2 {
      %cst_23 = arith.constant 0.000000e+00 : f32
      %33 = vector.broadcast %cst_23 : f32 to vector<8x32xf32>
      %c0_24 = arith.constant 0 : index
      %c0_25 = arith.constant 0 : index
      %34 = vector.load %arg10[%c0_24, %c0_25] : memref<8x32xf32, #tpu.memory_space<vmem>>, vector<8x32xf32>
      tpu.vector_store %arg10[%c0_24, %c0_25], %33 {strides = array<i32>} : memref<8x32xf32, #tpu.memory_space<vmem>>, vector<8x32xf32>,
    } else {
    }
    %c0 = arith.constant 0 : index
    %c0_1 = arith.constant 0 : index
    %3 = vector.load %arg2[%c0, %c0_1] : memref<8x32xf32, #tpu.memory_space<vmem>>, vector<8x32xf32>
    %4 = arith.truncf %3 : vector<8x32xf32> to vector<8x32xbf16>
    %c0_2 = arith.constant 0 : index
    %c0_3 = arith.constant 0 : index
    %5 = vector.load %arg3[%c0_2, %c0_3] : memref<32x128xbf16, #tpu.memory_space<vmem>>, vector<32x128xbf16>
    %cst = arith.constant dense<0.000000e+00> : vector<8x128xf32>
    %6 = tpu.matmul %4, %5, %cst {dimension_numbers = #tpu.dot_dimension_numbers<[1], [0], [0], [1], [0, 0, 1, 1], [], []>} : vector<8x32xbf16>, vector<32x128xbf16>, vector<8x128xf32> -> vector<8x128xf32>
    %c0_4 = arith.constant 0 : index
    %c0_5 = arith.constant 0 : index
    %7 = vector.load %arg5[%c0_4, %c0_5] : memref<1x128xf32, #tpu.memory_space<vmem>>, vector<1x128xf32>
    %8 = vector.broadcast %7 : vector<1x128xf32> to vector<8x128xf32>
    %9 = arith.addf %6, %8 : vector<8x128xf32>
    %c0_6 = arith.constant 0 : index
    %c0_7 = arith.constant 0 : index
    %10 = vector.load %arg4[%c0_6, %c0_7] : memref<32x128xbf16, #tpu.memory_space<vmem>>, vector<32x128xbf16>
    %cst_8 = arith.constant dense<0.000000e+00> : vector<8x128xf32>
    %11 = tpu.matmul %4, %10, %cst_8 {dimension_numbers = #tpu.dot_dimension_numbers<[1], [0], [0], [1], [0, 0, 1, 1], [], []>} : vector<8x32xbf16>, vector<32x128xbf16>, vector<8x128xf32> -> vector<8x128xf32>
    %c0_9 = arith.constant 0 : index
    %c0_10 = arith.constant 0 : index
    %12 = vector.load %arg6[%c0_9, %c0_10] : memref<1x128xf32, #tpu.memory_space<vmem>>, vector<1x128xf32>
    %13 = vector.broadcast %12 : vector<1x128xf32> to vector<8x128xf32>
    %14 = arith.addf %11, %13 : vector<8x128xf32>
    %cst_11 = arith.constant 5.000000e-01 : f32
    %15 = vector.broadcast %cst_11 : f32 to vector<8x128xf32>
    %16 = arith.mulf %15, %14 : vector<8x128xf32>
    %cst_12 = arith.constant 0.707106769 : f32
    %17 = vector.broadcast %cst_12 : f32 to vector<8x128xf32>
    %18 = arith.mulf %14, %17 : vector<8x128xf32>
    %19 = math.erf %18 : vector<8x128xf32>
    %cst_13 = arith.constant 1.000000e+00 : f32
    %20 = vector.broadcast %cst_13 : f32 to vector<8x128xf32>
    %21 = arith.addf %20, %19 : vector<8x128xf32>
    %22 = arith.mulf %16, %21 : vector<8x128xf32>
    %23 = arith.mulf %9, %22 : vector<8x128xf32>
    %c0_14 = arith.constant 0 : index
    %c0_15 = arith.constant 0 : index
    %24 = vector.load %arg10[%c0_14, %c0_15] : memref<8x32xf32, #tpu.memory_space<vmem>>, vector<8x32xf32>
    %25 = arith.truncf %23 : vector<8x128xf32> to vector<8x128xbf16>
    %c0_16 = arith.constant 0 : index
    %c0_17 = arith.constant 0 : index
    %26 = vector.load %arg7[%c0_16, %c0_17] : memref<128x32xbf16, #tpu.memory_space<vmem>>, vector<128x32xbf16>
    %cst_18 = arith.constant dense<0.000000e+00> : vector<8x32xf32>
    %27 = tpu.matmul %25, %26, %cst_18 {dimension_numbers = #tpu.dot_dimension_numbers<[1], [0], [0], [1], [0, 0, 1, 1], [], []>} : vector<8x128xbf16>, vector<128x32xbf16>, vector<8x32xf32> -> vector<8x32xf32>
    %28 = arith.addf %24, %27 : vector<8x32xf32>
    %c0_19 = arith.constant 0 : index
    %c0_20 = arith.constant 0 : index
    %29 = vector.load %arg10[%c0_19, %c0_20] : memref<8x32xf32, #tpu.memory_space<vmem>>, vector<8x32xf32>
    tpu.vector_store %arg10[%c0_19, %c0_20], %28 {strides = array<i32>} : memref<8x32xf32, #tpu.memory_space<vmem>>, vector<8x32xf32>,
    %c0_i32_21 = arith.constant 0 : i32
    %30 = arith.cmpi eq, %arg1, %c0_i32_21 : i32
    %31 = arith.extui %30 : i1 to i32
    %c0_i32_22 = arith.constant 0 : i32
    %32 = arith.cmpi ne, %31, %c0_i32_22 : i32
    scf.if %32 {
      %c0_23 = arith.constant 0 : index
      %c0_24 = arith.constant 0 : index
      %33 = vector.load %arg10[%c0_23, %c0_24] : memref<8x32xf32, #tpu.memory_space<vmem>>, vector<8x32xf32>
      %c0_25 = arith.constant 0 : index
      %c0_26 = arith.constant 0 : index
      %34 = vector.load %arg8[%c0_25, %c0_26] : memref<1x32xf32, #tpu.memory_space<vmem>>, vector<1x32xf32>
      %35 = vector.broadcast %34 : vector<1x32xf32> to vector<8x32xf32>
      %36 = arith.addf %33, %35 : vector<8x32xf32>
      %c0_27 = arith.constant 0 : index
      %c0_28 = arith.constant 0 : index
      %37 = vector.load %arg9[%c0_27, %c0_28] : memref<8x32xf32, #tpu.memory_space<vmem>>, vector<8x32xf32>
      tpu.vector_store %arg9[%c0_27, %c0_28], %36 {strides = array<i32>} : memref<8x32xf32, #tpu.memory_space<vmem>>, vector<8x32xf32>,
    } else {
    }
    return
  }
  func.func @transform_0(%arg0: i32, %arg1: i32) -> (i32, i32) {
    %c0_i32 = arith.constant 0 : i32
    %c0_i32_0 = arith.constant 0 : i32
    return %arg0, %c0_i32 : i32, i32
  }
  func.func @transform_1(%arg0: i32, %arg1: i32) -> (i32, i32) {
    %c0_i32 = arith.constant 0 : i32
    %c0_i32_0 = arith.constant 0 : i32
    return %c0_i32, %arg1 : i32, i32
  }
  func.func @transform_2(%arg0: i32, %arg1: i32) -> (i32, i32) {
    %c0_i32 = arith.constant 0 : i32
    %c0_i32_0 = arith.constant 0 : i32
    return %c0_i32, %arg1 : i32, i32
  }
  func.func @transform_3(%arg0: i32, %arg1: i32) -> (i32, i32) {
    %c0_i32 = arith.constant 0 : i32
    %c0_i32_0 = arith.constant 0 : i32
    return %c0_i32, %arg1 : i32, i32
  }
  func.func @transform_4(%arg0: i32, %arg1: i32) -> (i32, i32) {
    %c0_i32 = arith.constant 0 : i32
    %c0_i32_0 = arith.constant 0 : i32
    return %c0_i32, %arg1 : i32, i32
  }
  func.func @transform_5(%arg0: i32, %arg1: i32) -> (i32, i32) {
    %c0_i32 = arith.constant 0 : i32
    %c0_i32_0 = arith.constant 0 : i32
    return %arg1, %c0_i32 : i32, i32
  }
  func.func @transform_6(%arg0: i32, %arg1: i32) -> (i32, i32) {
    %c0_i32 = arith.constant 0 : i32
    %c0_i32_0 = arith.constant 0 : i32
    %c0_i32_1 = arith.constant 0 : i32
    return %c0_i32, %c0_i32_0 : i32, i32
  }
  func.func @transform_7(%arg0: i32, %arg1: i32) -> (i32, i32) {
    %c0_i32 = arith.constant 0 : i32
    %c0_i32_0 = arith.constant 0 : i32
    return %arg0, %c0_i32 : i32, i32
  }
}

</mosaic_0001>

<bundles_post_ra>
// kernel: tpu_custom_call.1
= control target key start
LH: loop header
LB: loop body
LE: loop exit
PB: predicated region body
PF: predicated region fallthrough
CT: control target
= control target key end

     0   :  { %12 = vsyncpa [#allocation4], 0  ;;  %s1229_s0 = inlined_call_operand.vmem [shape: f32[16,32], index: 0, kind: input, shape index: {}]   ;;  %s1230_s1 = inlined_call_operand.vmem [shape: bf16[32,128], index: 1, kind: input, shape index: {}]   ;;  %s1231_s2 = inlined_call_operand.vmem [shape: bf16[32,128], index: 2, kind: input, shape index: {}]   ;;  %s1232_s3 = inlined_call_operand.vmem [shape: f32[1,128], index: 3, kind: input, shape index: {}]   ;;  %s1233_s4 = inlined_call_operand.vmem [shape: f32[1,128], index: 4, kind: input, shape index: {}]   ;;  %s1234_s5 = inlined_call_operand.vmem [shape: bf16[128,32], index: 5, kind: input, shape index: {}]   ;;  %s1235_s6 = inlined_call_operand.vmem [shape: f32[1,32], index: 6, kind: input, shape index: {}]   ;;  %s1236_s7 = inlined_call_operand.hbm [shape: f32[16,32], index: 7, kind: output, shape index: {}]  }
   0x1   :  { %14 = vsyncpa [#allocation4 + $0x1], 0  ;;  %s1064_s24 = smov 0   ;;  %s1066_s25 = smov 0  }
   0x2   :  { %s1068_s26 = smov 0   ;;  %s1070_s27 = smov 0  }
   0x3   :  { %s1072_s28 = smov 0   ;;  %s1074_s29 = smov 0  }
   0x4 LB: > { %s786_s30 = sadd.s32 4294967295, %s1019_s29   ;;  %s787_s8 = sadd.s32 4294967294, %s1019_s29   ;;  %s1019_s29 = sphi %s1074_s29, %s20_s29   ;;  %s1015_s28 = sphi %s1072_s28, %s1243_s28   ;;  %s1011_s27 = sphi %s1070_s27, %s1242_s27   ;;  %s1007_s26 = sphi %s1068_s26, %s1241_s26   ;;  %s1003_s25 = sphi %s1066_s25, %s1240_s25   ;;  %s999_s24 = sphi %s1064_s24, %s1239_s24  }
   0x5   : > { %s32_s9 = sadd.s32 1, %s1015_s28  ;;  %s216_s10 = sadd.s32 1, %s1007_s26 }
   0x6   : > { %p34_p0 = scmp.ge.s32.totalorder %s32_s9, 2  ;;  %p226_p1 = scmp.ne.s32.totalorder %s1007_s26, %s1003_s25 }
   0x7   : > { %p227_p2 = scmp.eq.s32.totalorder %s786_s30, 1  ;;  %p232_p3 = scmp.ne.s32.totalorder %s1003_s25, %s999_s24 }
   0x8   : > { %s1245_s9 = smov (%p34_p0, %s32_s9), 0  ;;  %p233_p5 = scmp.eq.s32.totalorder %s787_s8, 1 }
   0x9   : > { %p1104_p4 = por %p227_p2, %p226_p1  ;;  %s213_s12 = ssub.s32 %s1015_s28, %s1245_s9 }
   0xa   : > { %p795_p6 = scmp.ge.s32.totalorder %s1019_s29, 1  ;;  %p214_p7 = scmp.eq.s32.totalorder %s213_s12, 0 }
   0xb   : > { %p1111_p8 = por %p233_p5, %p232_p3  ;;  %p296_p9 = scmp.lt.s32.totalorder %s1019_s29, 3 }
   0xc   : > { %s1117_s14 = scalar_select %p214_p7, %s1007_s26, %s216_s10  }
   0xd   : > { %p297_p10 = pnand %p795_p6, %p296_p9 }
   0xe   : > { %v927_v0 = vld [vmem:[%s1230_s1] sm:$0xff] (!%p297_p10)   ;;  %v1021_v1 = vmov (!%p297_p10), 0.0   ;;  %v928_v2 = vld [vmem:[%s1230_s1 + $0x8] sm:$0xff] (!%p297_p10)   ;;  %vm1022_vm0 = vmmov (!%p297_p10), 0   ;;  %p346_p11 = scmp.lt.s32.totalorder (!%p297_p10), %s1011_s27, 1  ;;  %vm375_vm1 = vcmask (!%p297_p10), 261120  }
   0xf   : > { %300 = sbr.rel (%p297_p10) target bundleno = 510 (0x1fe), region = 48  ;;  %834 = vmatprep.subr.bf16.mxu1 (!%p297_p10), %v1021_v1  ;;  %850 = vmatprep.subr.bf16.mxu0 (!%p297_p10), %v1021_v1  ;;  %376 = vst.msk [vmem:[#allocation2] sm:$0xff] (!%p297_p10), %vm375_vm1, %v1021_v1  ;;  %v929_v3 = vld [vmem:[%s1231_s2] sm:$0xff] (!%p297_p10)   ;;  %v930_v6 = vld [vmem:[%s1231_s2 + $0x8] sm:$0xff] (!%p297_p10)   ;;  %v933_v9 = vld [vmem:[%s1234_s5 + $0x10] sm:$0xff] (!%p297_p10)   ;;  %s343_s22 = sand.u32 (!%p297_p10), 1, %s1003_s25  }
  0x10   : > { %835 = vmatpush3.bf16.msra.mxu1 (!%p297_p10), %v927_v0  ;;  %838 = vmatprep.mubr.msk.bf16.mxu1 (!%p297_p10), %vm1022_vm0, %v1021_v1  ;;  %v931_v7 = vld [vmem:[%s1234_s5] sm:$0xff] (!%p297_p10)   ;;  %v932_v8 = vld [vmem:[%s1234_s5 + $0x8] sm:$0xff] (!%p297_p10)   ;;  %v934_v10 = vld [vmem:[%s1234_s5 + $0x18] sm:$0xff] (!%p297_p10)   ;;  %s796_s23 = sshll.u32 (!%p297_p10), %s343_s22, 3  ;;  %s816_s10 = sshll.u32 (!%p297_p10), %s1011_s27, 7 }
  0x11   : > { %836 = vmatprep.subr.bf16.mxu1 (!%p297_p10), %v1021_v1  ;;  %866 = vmatprep.mubr.msk.bf16.mxu0 (!%p297_p10), %vm1022_vm0, %v1021_v1  ;;  %v935_v11 = vld [vmem:[%s1234_s5 + $0x20] sm:$0xff] (!%p297_p10)   ;;  %v936_v12 = vld [vmem:[%s1234_s5 + $0x28] sm:$0xff] (!%p297_p10)   ;;  %v937_v13 = vld [vmem:[%s1234_s5 + $0x30] sm:$0xff] (!%p297_p10)   ;;  %s345_s12 = scalar_lea.vmem (!%p297_p10), [#allocation3], %s796_s23  ;;  %s1181_s18 = scalar_lea.hbm (!%p297_p10), %s1236_s7, %s816_s10 }
  0x12   : > { %851 = vmatpush3.bf16.msra.mxu0 (!%p297_p10), %v931_v7  ;;  %v938_v14 = vld [vmem:[%s1234_s5 + $0x38] sm:$0xff] (!%p297_p10)   ;;  %v802_v19 = vld [vmem:[%s1233_s4] ss:$0 sm:$0xff] (!%p297_p10)  ;;  %s650_s15 = sshll.u32 (!%p297_p10), %s345_s12, 4  ;;  %s1183_s15 = int_to_ptr.vmem [resolvable:$true] %s650_s15 }
  0x13   : > { %852 = vmatprep.subr.bf16.mxu0 (!%p297_p10), %v1021_v1  ;;  %v798_v27 = vld [vmem:[%s1232_s3] ss:$0 sm:$0xff] (!%p297_p10) }
  0x14   : > { %837 = vmatpush3.bf16.msra.mxu1 (!%p297_p10), %v928_v2  ;;  %v814_v40 = vld [vmem:[%s1235_s6] ss:$0 sm:$0xff] (!%p297_p10) }
  0x15   : > { %842 = vmatprep.subr.bf16.mxu1 (!%p297_p10), %v1021_v1 }
  0x16   : > { %s347_s19 = scalar_select %p346_p11, %s1011_s27, 1  ;;  %853 = vmatpush3.bf16.msra.mxu0 %v932_v8  ;;  %v515_v34 = vld [vmem:[#allocation2] sm:$0xff] }
  0x17   : > { %854 = vmatprep.subr.bf16.mxu0 %v1021_v1  ;;  %s1023_s27 = smov [#allocation3]  }
  0x18   : > { %s797_s20 = sshll.u32 %s347_s19, 3  ;;  %s637_s19 = scalar_lea.sflag [#allocation4], %s343_s22 }
  0x19   : > { %s349_s8 = scalar_lea.vmem %s1229_s0, %s797_s20  ;;  %s941_s20 = scalar_lea.vmem %s1183_s15, 128 }
  0x1a   : > { %v377_v4 = vld [vmem:[%s349_s8] sm:$0xff]  ;;  %855 = vmatpush3.bf16.msra.mxu0 %v933_v9  ;;  %p942_p12 = scmp.ne.s32.totalorder %s1183_s15, %s941_s20  ;;  %s945_s21 = sshll.u32 %s1023_s27, 4  ;;  %s946_s21 = int_to_ptr.vmem [resolvable:$false] %s945_s21 }
  0x1b   : > { %v378_v5 = vpack.c.bf16 %v377_v4, %v377_v4  ;;  %856 = vmatprep.subr.bf16.mxu0 %v1021_v1  ;;  %s947_s23 = scalar_lea.vmem %s946_s21, 256  ;;  %p948_p1 = scmp.lt.s32.totalorder %s1183_s15, %s946_s21 }
  0x1c   : > { %p943_p13 = pnand %p942_p12, %p1104_p4  ;;  %p949_p2 = scmp.lt.s32.totalorder %s947_s23, %s941_s20 }
  0x1d   : > { %839 = vmatmul.mubr.msk.bf16.vlgmr.msra.gmra.mrb[0].mxu1 %vm375_vm1, %v378_v5 }
  0x1e   : > { %843 = vmatpush3.bf16.msra.mxu1 %v929_v3  ;;  %846 = vmatprep.mubr.msk.bf16.mxu1 %vm1022_vm0, %v1021_v1  ;;  %p944_p0 = pneg %p943_p13  ;;  %p950_p3 = por %p949_p2, %p948_p1 }
  0x1f   : > { %844 = vmatprep.subr.bf16.mxu1 %v1021_v1  ;;  %857 = vmatpush3.bf16.msra.mxu0 %v934_v10 }
  0x20   : > { %858 = vmatprep.subr.bf16.mxu0 %v1021_v1  ;;  %p951_p5 = pnand %p950_p3, %p944_p0 }
  0x22   : > { %845 = vmatpush3.bf16.msra.mxu1 %v930_v6 }
  0x23   : > { %859 = vmatpush3.bf16.msra.mxu0 %v935_v11 }
  0x24   : > { %860 = vmatprep.subr.bf16.mxu0 %v1021_v1 }
  0x25   : > { %847 = vmatmul.mubr.msk.bf16.vlgmr.msra.gmra.mrb[4].mxu1 %vm375_vm1, %v378_v5 }
  0x27   : > { %861 = vmatpush3.bf16.msra.mxu0 %v936_v12 }
  0x28   : > { %862 = vmatprep.subr.bf16.mxu0 %v1021_v1 }
  0x2b   : > { %863 = vmatpush3.bf16.msra.mxu0 %v937_v13 }
  0x2c   : > { %864 = vmatprep.subr.bf16.mxu0 %v1021_v1 }
  0x2f   : > { %865 = vmatpush3.bf16.msra.mxu0 %v938_v14 }
  0xf0   : > { %v440_v15 = vpop.f32.mrb[0].mxu1 }
  0xf1   : > { %v840_v16 = vpop.f32.mrb[1].mxu1  ;;  %v441_v30 = vadd.f32 %v798_v27, %v440_v15 }
  0xf2   : > { %v443_v17 = vpop.f32.mrb[2].mxu1 }
  0xf3   : > { %v841_v18 = vpop.f32.mrb[3].mxu1 }
  0xf8   : > { %v503_v20 = vpop.f32.mrb[4].mxu1 }
  0xf9   : > { %v504_v21 = vadd.f32 %v802_v19, %v503_v20  ;;  %v848_v22 = vpop.f32.mrb[5].mxu1 }
  0xfa   : > { %v506_v23 = vpop.f32.mrb[6].mxu1 }
  0xfb   : > { %v510_v24 = vmul.f32 0.70710677, %v504_v21  ;;  %v849_v25 = vpop.f32.mrb[7].mxu1  ;;  %v509_v28 = vmul.f32 0.5, %v504_v21 }
  0xfd   : > { %939 = verf.f32 %v510_v24 }
 0x107   : > { %v940_v26 = vpop.eup %939 }
 0x108   : > { %v512_v29 = vadd.f32 1.0, %v940_v26 }
 0x10a   : > { %v513_v31 = vmul.f32 %v512_v29, %v509_v28 }
 0x10c   : > { %v514_v32 = vmul.f32 %v513_v31, %v441_v30 }
 0x10e   : > { %v516_v33 = vpack.c.bf16 %v514_v32, %v514_v32 }
 0x110   : > { %867 = vmatmul.mubr.bf16.vlgmr.msra.gmra.mrb[0].mxu0 %v516_v33 }
 0x1e3   : > { %v615_v35 = vpop.f32.mrb[0].mxu0 }
 0x1e4   : > { %v621_v36 = vadd.f32 %v615_v35, %v515_v34  ;;  %v868_v37 = vpop.f32.mrb[1].mxu0 }
 0x1e5   : > { %v618_v38 = vpop.f32.mrb[2].mxu0 }
 0x1e6   : > { %622 = vst.msk [vmem:[#allocation2] sm:$0xff] %vm375_vm1, %v621_v36  ;;  %v869_v39 = vpop.f32.mrb[3].mxu0 }
 0x1ed   : > { %v626_v41 = vld [vmem:[#allocation2] sm:$0xff] }
 0x1ee   : > { %v634_v42 = vadd.f32 %v814_v40, %v626_v41 }
 0x1f0   : > { %635 = vst.msk [vmem:[%s345_s12] sm:$0xff] %vm375_vm1, %v634_v42 }
 0x1f1   : > { %954 = shalt.err (!%p951_p5)
}
 0x1f2   : > { %s955_s22 = scalar_lea.hbm %s1181_s18, 128  ;;  %s959_s10 = scalar_lea.hbm %s1236_s7, 256 }
 0x1f3   : > { %p956_p6 = scmp.ne.s32.totalorder %s1181_s18, %s955_s22  ;;  %p960_p10 = scmp.lt.u32.totalorder %s1181_s18, %s1236_s7 }
 0x1f4   : > { %p961_p11 = scmp.lt.u32.totalorder %s959_s10, %s955_s22  ;;  %p963_p13 = scmp.lt.u32.totalorder %s955_s22, %s1181_s18 }
 0x1f5   : > { %p957_p7 = pnand %p956_p6, %p1104_p4 }
 0x1f6   : > { %p962_p12 = por %p961_p11, %p960_p10 }
 0x1f7   : > { %p958_p9 = pneg %p957_p7 }
 0x1f8   : > { %p964_p0 = por %p963_p13, %p962_p12 }
 0x1fa   : > { %p965_p1 = pnand %p964_p0, %p958_p9 }
 0x1fc   : > { %968 = shalt.err (!%p965_p1)
}
 0x1fd   : > { %870 = dma.vmem_to_hbm [thread:$0]  (%p1104_p4), %s1183_s15, 128, %s1181_s18, %s637_s19  }
 0x1fe PF: > { %p876_p2 = scmp.ge.s32.totalorder %s1019_s29, 2  ;;  %s662_s17 = sand.u32 1, %s999_s24  }
 0x1ff   : > { %s663_s20 = scalar_lea.sflag [#allocation4], %s662_s17 }
 0x200   : > { %p873_p3 = pnand %p876_p2, %p1111_p8 }
 0x202   : > { %994 = dma.done.wait (!%p873_p3), %s663_s20, 128  }
 0x203   : > { %996 = vsyncadd (!%p873_p3), %s663_s20, 4294967168  ;;  %s20_s29 = sadd.s32 1, %s1019_s29   ;;  %s1239_s24 = smov %s1003_s25 }
 0x204   : > { %p17_p5 = scmp.ge.s32.totalorder %s20_s29, 4   ;;  %s1240_s25 = smov %s1007_s26 }
 0x205   : > { %s1241_s26 = smov %s1117_s14  ;;  %s1242_s27 = smov %s1015_s28 }
 0x206   : > { %s1243_s28 = smov %s1245_s9  ;;  %19 = sbr.rel (!%p17_p5) target bundleno = 4 (0x4), region = 106 }
 0x20d   :  { %668 = vsyncpa [#allocation4], 1 }
 0x20e   :  { %670 = vsyncpa [#allocation4 + $0x1], 1 }

// kernel: tpu_custom_call.1
= control target key start
LH: loop header
LB: loop body
LE: loop exit
PB: predicated region body
PF: predicated region fallthrough
CT: control target
= control target key end

     0   :  { %12 = vsyncpa [#allocation4], 0  ;;  %s1229_s0 = inlined_call_operand.vmem [shape: f32[16,32], index: 0, kind: input, shape index: {}]   ;;  %s1230_s1 = inlined_call_operand.vmem [shape: bf16[32,128], index: 1, kind: input, shape index: {}]   ;;  %s1231_s2 = inlined_call_operand.vmem [shape: bf16[32,128], index: 2, kind: input, shape index: {}]   ;;  %s1232_s3 = inlined_call_operand.vmem [shape: f32[1,128], index: 3, kind: input, shape index: {}]   ;;  %s1233_s4 = inlined_call_operand.vmem [shape: f32[1,128], index: 4, kind: input, shape index: {}]   ;;  %s1234_s5 = inlined_call_operand.vmem [shape: bf16[128,32], index: 5, kind: input, shape index: {}]   ;;  %s1235_s6 = inlined_call_operand.vmem [shape: f32[1,32], index: 6, kind: input, shape index: {}]   ;;  %s1236_s7 = inlined_call_operand.hbm [shape: f32[16,32], index: 7, kind: output, shape index: {}]  }
   0x1   :  { %14 = vsyncpa [#allocation4 + $0x1], 0  ;;  %s1064_s24 = smov 0   ;;  %s1066_s25 = smov 0  }
   0x2   :  { %s1068_s26 = smov 0   ;;  %s1070_s27 = smov 0  }
   0x3   :  { %s1072_s28 = smov 0   ;;  %s1074_s29 = smov 0  }
   0x4 LB: > { %s786_s30 = sadd.s32 4294967295, %s1019_s29   ;;  %s787_s8 = sadd.s32 4294967294, %s1019_s29   ;;  %s1019_s29 = sphi %s1074_s29, %s20_s29   ;;  %s1015_s28 = sphi %s1072_s28, %s1243_s28   ;;  %s1011_s27 = sphi %s1070_s27, %s1242_s27   ;;  %s1007_s26 = sphi %s1068_s26, %s1241_s26   ;;  %s1003_s25 = sphi %s1066_s25, %s1240_s25   ;;  %s999_s24 = sphi %s1064_s24, %s1239_s24  }
   0x5   : > { %s32_s9 = sadd.s32 1, %s1015_s28  ;;  %s216_s10 = sadd.s32 1, %s1007_s26 }
   0x6   : > { %p34_p0 = scmp.ge.s32.totalorder %s32_s9, 2  ;;  %p226_p1 = scmp.ne.s32.totalorder %s1007_s26, %s1003_s25 }
   0x7   : > { %p227_p2 = scmp.eq.s32.totalorder %s786_s30, 1  ;;  %p232_p3 = scmp.ne.s32.totalorder %s1003_s25, %s999_s24 }
   0x8   : > { %s1245_s9 = smov (%p34_p0, %s32_s9), 0  ;;  %p233_p5 = scmp.eq.s32.totalorder %s787_s8, 1 }
   0x9   : > { %p1104_p4 = por %p227_p2, %p226_p1  ;;  %s213_s12 = ssub.s32 %s1015_s28, %s1245_s9 }
   0xa   : > { %p795_p6 = scmp.ge.s32.totalorder %s1019_s29, 1  ;;  %p214_p7 = scmp.eq.s32.totalorder %s213_s12, 0 }
   0xb   : > { %p1111_p8 = por %p233_p5, %p232_p3  ;;  %p296_p9 = scmp.lt.s32.totalorder %s1019_s29, 3 }
   0xc   : > { %s1117_s14 = scalar_select %p214_p7, %s1007_s26, %s216_s10  }
   0xd   : > { %p297_p10 = pnand %p795_p6, %p296_p9 }
   0xe   : > { %v927_v0 = vld [vmem:[%s1230_s1] sm:$0xff] (!%p297_p10)   ;;  %v1021_v1 = vmov (!%p297_p10), 0.0   ;;  %v928_v2 = vld [vmem:[%s1230_s1 + $0x8] sm:$0xff] (!%p297_p10)   ;;  %vm1022_vm0 = vmmov (!%p297_p10), 0   ;;  %p346_p11 = scmp.lt.s32.totalorder (!%p297_p10), %s1011_s27, 1  ;;  %vm375_vm1 = vcmask (!%p297_p10), 261120  }
   0xf   : > { %300 = sbr.rel (%p297_p10) target bundleno = 510 (0x1fe), region = 48  ;;  %834 = vmatprep.subr.bf16.mxu1 (!%p297_p10), %v1021_v1  ;;  %850 = vmatprep.subr.bf16.mxu0 (!%p297_p10), %v1021_v1  ;;  %376 = vst.msk [vmem:[#allocation2] sm:$0xff] (!%p297_p10), %vm375_vm1, %v1021_v1  ;;  %v929_v3 = vld [vmem:[%s1231_s2] sm:$0xff] (!%p297_p10)   ;;  %v930_v6 = vld [vmem:[%s1231_s2 + $0x8] sm:$0xff] (!%p297_p10)   ;;  %v933_v9 = vld [vmem:[%s1234_s5 + $0x10] sm:$0xff] (!%p297_p10)   ;;  %s343_s22 = sand.u32 (!%p297_p10), 1, %s1003_s25  }
  0x10   : > { %835 = vmatpush3.bf16.msra.mxu1 (!%p297_p10), %v927_v0  ;;  %838 = vmatprep.mubr.msk.bf16.mxu1 (!%p297_p10), %vm1022_vm0, %v1021_v1  ;;  %v931_v7 = vld [vmem:[%s1234_s5] sm:$0xff] (!%p297_p10)   ;;  %v932_v8 = vld [vmem:[%s1234_s5 + $0x8] sm:$0xff] (!%p297_p10)   ;;  %v934_v10 = vld [vmem:[%s1234_s5 + $0x18] sm:$0xff] (!%p297_p10)   ;;  %s796_s23 = sshll.u32 (!%p297_p10), %s343_s22, 3  ;;  %s816_s10 = sshll.u32 (!%p297_p10), %s1011_s27, 7 }
  0x11   : > { %836 = vmatprep.subr.bf16.mxu1 (!%p297_p10), %v1021_v1  ;;  %866 = vmatprep.mubr.msk.bf16.mxu0 (!%p297_p10), %vm1022_vm0, %v1021_v1  ;;  %v935_v11 = vld [vmem:[%s1234_s5 + $0x20] sm:$0xff] (!%p297_p10)   ;;  %v936_v12 = vld [vmem:[%s1234_s5 + $0x28] sm:$0xff] (!%p297_p10)   ;;  %v937_v13 = vld [vmem:[%s1234_s5 + $0x30] sm:$0xff] (!%p297_p10)   ;;  %s345_s12 = scalar_lea.vmem (!%p297_p10), [#allocation3], %s796_s23  ;;  %s1181_s18 = scalar_lea.hbm (!%p297_p10), %s1236_s7, %s816_s10 }
  0x12   : > { %851 = vmatpush3.bf16.msra.mxu0 (!%p297_p10), %v931_v7  ;;  %v938_v14 = vld [vmem:[%s1234_s5 + $0x38] sm:$0xff] (!%p297_p10)   ;;  %v802_v19 = vld [vmem:[%s1233_s4] ss:$0 sm:$0xff] (!%p297_p10)  ;;  %s650_s15 = sshll.u32 (!%p297_p10), %s345_s12, 4  ;;  %s1183_s15 = int_to_ptr.vmem [resolvable:$true] %s650_s15 }
  0x13   : > { %852 = vmatprep.subr.bf16.mxu0 (!%p297_p10), %v1021_v1  ;;  %v798_v27 = vld [vmem:[%s1232_s3] ss:$0 sm:$0xff] (!%p297_p10) }
  0x14   : > { %837 = vmatpush3.bf16.msra.mxu1 (!%p297_p10), %v928_v2  ;;  %v814_v40 = vld [vmem:[%s1235_s6] ss:$0 sm:$0xff] (!%p297_p10) }
  0x15   : > { %842 = vmatprep.subr.bf16.mxu1 (!%p297_p10), %v1021_v1 }
  0x16   : > { %s347_s19 = scalar_select %p346_p11, %s1011_s27, 1  ;;  %853 = vmatpush3.bf16.msra.mxu0 %v932_v8  ;;  %v515_v34 = vld [vmem:[#allocation2] sm:$0xff] }
  0x17   : > { %854 = vmatprep.subr.bf16.mxu0 %v1021_v1  ;;  %s1023_s27 = smov [#allocation3]  }
  0x18   : > { %s797_s20 = sshll.u32 %s347_s19, 3  ;;  %s637_s19 = scalar_lea.sflag [#allocation4], %s343_s22 }
  0x19   : > { %s349_s8 = scalar_lea.vmem %s1229_s0, %s797_s20  ;;  %s941_s20 = scalar_lea.vmem %s1183_s15, 128 }
  0x1a   : > { %v377_v4 = vld [vmem:[%s349_s8] sm:$0xff]  ;;  %855 = vmatpush3.bf16.msra.mxu0 %v933_v9  ;;  %p942_p12 = scmp.ne.s32.totalorder %s1183_s15, %s941_s20  ;;  %s945_s21 = sshll.u32 %s1023_s27, 4  ;;  %s946_s21 = int_to_ptr.vmem [resolvable:$false] %s945_s21 }
  0x1b   : > { %v378_v5 = vpack.c.bf16 %v377_v4, %v377_v4  ;;  %856 = vmatprep.subr.bf16.mxu0 %v1021_v1  ;;  %s947_s23 = scalar_lea.vmem %s946_s21, 256  ;;  %p948_p1 = scmp.lt.s32.totalorder %s1183_s15, %s946_s21 }
  0x1c   : > { %p943_p13 = pnand %p942_p12, %p1104_p4  ;;  %p949_p2 = scmp.lt.s32.totalorder %s947_s23, %s941_s20 }
  0x1d   : > { %839 = vmatmul.mubr.msk.bf16.vlgmr.msra.gmra.mrb[0].mxu1 %vm375_vm1, %v378_v5 }
  0x1e   : > { %843 = vmatpush3.bf16.msra.mxu1 %v929_v3  ;;  %846 = vmatprep.mubr.msk.bf16.mxu1 %vm1022_vm0, %v1021_v1  ;;  %p944_p0 = pneg %p943_p13  ;;  %p950_p3 = por %p949_p2, %p948_p1 }
  0x1f   : > { %844 = vmatprep.subr.bf16.mxu1 %v1021_v1  ;;  %857 = vmatpush3.bf16.msra.mxu0 %v934_v10 }
  0x20   : > { %858 = vmatprep.subr.bf16.mxu0 %v1021_v1  ;;  %p951_p5 = pnand %p950_p3, %p944_p0 }
  0x22   : > { %845 = vmatpush3.bf16.msra.mxu1 %v930_v6 }
  0x23   : > { %859 = vmatpush3.bf16.msra.mxu0 %v935_v11 }
  0x24   : > { %860 = vmatprep.subr.bf16.mxu0 %v1021_v1 }
  0x25   : > { %847 = vmatmul.mubr.msk.bf16.vlgmr.msra.gmra.mrb[4].mxu1 %vm375_vm1, %v378_v5 }
  0x27   : > { %861 = vmatpush3.bf16.msra.mxu0 %v936_v12 }
  0x28   : > { %862 = vmatprep.subr.bf16.mxu0 %v1021_v1 }
  0x2b   : > { %863 = vmatpush3.bf16.msra.mxu0 %v937_v13 }
  0x2c   : > { %864 = vmatprep.subr.bf16.mxu0 %v1021_v1 }
  0x2f   : > { %865 = vmatpush3.bf16.msra.mxu0 %v938_v14 }
  0xf0   : > { %v440_v15 = vpop.f32.mrb[0].mxu1 }
  0xf1   : > { %v840_v16 = vpop.f32.mrb[1].mxu1  ;;  %v441_v30 = vadd.f32 %v798_v27, %v440_v15 }
  0xf2   : > { %v443_v17 = vpop.f32.mrb[2].mxu1 }
  0xf3   : > { %v841_v18 = vpop.f32.mrb[3].mxu1 }
  0xf8   : > { %v503_v20 = vpop.f32.mrb[4].mxu1 }
  0xf9   : > { %v504_v21 = vadd.f32 %v802_v19, %v503_v20  ;;  %v848_v22 = vpop.f32.mrb[5].mxu1 }
  0xfa   : > { %v506_v23 = vpop.f32.mrb[6].mxu1 }
  0xfb   : > { %v510_v24 = vmul.f32 0.70710677, %v504_v21  ;;  %v849_v25 = vpop.f32.mrb[7].mxu1  ;;  %v509_v28 = vmul.f32 0.5, %v504_v21 }
  0xfd   : > { %939 = verf.f32 %v510_v24 }
 0x107   : > { %v940_v26 = vpop.eup %939 }
 0x108   : > { %v512_v29 = vadd.f32 1.0, %v940_v26 }
 0x10a   : > { %v513_v31 = vmul.f32 %v512_v29, %v509_v28 }
 0x10c   : > { %v514_v32 = vmul.f32 %v513_v31, %v441_v30 }
 0x10e   : > { %v516_v33 = vpack.c.bf16 %v514_v32, %v514_v32 }
 0x110   : > { %867 = vmatmul.mubr.bf16.vlgmr.msra.gmra.mrb[0].mxu0 %v516_v33 }
 0x1e3   : > { %v615_v35 = vpop.f32.mrb[0].mxu0 }
 0x1e4   : > { %v621_v36 = vadd.f32 %v615_v35, %v515_v34  ;;  %v868_v37 = vpop.f32.mrb[1].mxu0 }
 0x1e5   : > { %v618_v38 = vpop.f32.mrb[2].mxu0 }
 0x1e6   : > { %622 = vst.msk [vmem:[#allocation2] sm:$0xff] %vm375_vm1, %v621_v36  ;;  %v869_v39 = vpop.f32.mrb[3].mxu0 }
 0x1ed   : > { %v626_v41 = vld [vmem:[#allocation2] sm:$0xff] }
 0x1ee   : > { %v634_v42 = vadd.f32 %v814_v40, %v626_v41 }
 0x1f0   : > { %635 = vst.msk [vmem:[%s345_s12] sm:$0xff] %vm375_vm1, %v634_v42 }
 0x1f1   : > { %954 = shalt.err (!%p951_p5)
}
 0x1f2   : > { %s955_s22 = scalar_lea.hbm %s1181_s18, 128  ;;  %s959_s10 = scalar_lea.hbm %s1236_s7, 256 }
 0x1f3   : > { %p956_p6 = scmp.ne.s32.totalorder %s1181_s18, %s955_s22  ;;  %p960_p10 = scmp.lt.u32.totalorder %s1181_s18, %s1236_s7 }
 0x1f4   : > { %p961_p11 = scmp.lt.u32.totalorder %s959_s10, %s955_s22  ;;  %p963_p13 = scmp.lt.u32.totalorder %s955_s22, %s1181_s18 }
 0x1f5   : > { %p957_p7 = pnand %p956_p6, %p1104_p4 }
 0x1f6   : > { %p962_p12 = por %p961_p11, %p960_p10 }
 0x1f7   : > { %p958_p9 = pneg %p957_p7 }
 0x1f8   : > { %p964_p0 = por %p963_p13, %p962_p12 }
 0x1fa   : > { %p965_p1 = pnand %p964_p0, %p958_p9 }
 0x1fc   : > { %968 = shalt.err (!%p965_p1)
}
 0x1fd   : > { %870 = dma.vmem_to_hbm [thread:$0]  (%p1104_p4), %s1183_s15, 128, %s1181_s18, %s637_s19  }
 0x1fe PF: > { %p876_p2 = scmp.ge.s32.totalorder %s1019_s29, 2  ;;  %s662_s17 = sand.u32 1, %s999_s24  }
 0x1ff   : > { %s663_s20 = scalar_lea.sflag [#allocation4], %s662_s17 }
 0x200   : > { %p873_p3 = pnand %p876_p2, %p1111_p8 }
 0x202   : > { %994 = dma.done.wait (!%p873_p3), %s663_s20, 128  }
 0x203   : > { %996 = vsyncadd (!%p873_p3), %s663_s20, 4294967168  ;;  %s20_s29 = sadd.s32 1, %s1019_s29   ;;  %s1239_s24 = smov %s1003_s25 }
 0x204   : > { %p17_p5 = scmp.ge.s32.totalorder %s20_s29, 4   ;;  %s1240_s25 = smov %s1007_s26 }
 0x205   : > { %s1241_s26 = smov %s1117_s14  ;;  %s1242_s27 = smov %s1015_s28 }
 0x206   : > { %s1243_s28 = smov %s1245_s9  ;;  %19 = sbr.rel (!%p17_p5) target bundleno = 4 (0x4), region = 106 }
 0x20d   :  { %668 = vsyncpa [#allocation4], 1 }
 0x20e   :  { %670 = vsyncpa [#allocation4 + $0x1], 1 }

</bundles_post_ra>
